<compile_context>
chip_gen: v6e
topology: v6e:2x2x1
jax: 0.10.0
libtpu: 0.0.40
codegen_flags: <defaults>
</compile_context>

<pallas_src>
import jax
import jax.numpy as jnp
from jax.experimental import pallas as pl
from jax.experimental.pallas import tpu as pltpu


def _bias_layer_kernel(alpha_ref, beta_ref, x_ref, o_ref):
    # alpha_ref / beta_ref live in SMEM as shape-(1,) f32 scalars.
    a = alpha_ref[0]
    b = beta_ref[0]
    # One vmul + one vadd per vreg on the VPU; cast back to the output dtype so
    # non-f32 activations (e.g. bf16) store correctly.
    o_ref[...] = (a * x_ref[...] + b).astype(o_ref.dtype)


def _round_up(v, m):
    return ((v + m - 1) // m) * m


def _pick_cols(n):
    """Largest lane-dense width (multiple of 128) that divides n -> no-pad path."""
    for c in (1024, 512, 256, 128):
        if n % c == 0:
            return c, False
    return 1024, True


def _target_tile_bytes():
    # Per-generation per-tile byte budget. 4x tile (in + out, double-buffered)
    # must stay within the default scoped-VMEM budget so no vmem_limit_bytes
    # override is needed.
    try:
        kind = jax.devices()[0].device_kind.lower()
    except Exception:  # pragma: no cover - be robust off-TPU
        kind = ""
    if "v5" in kind:
        return 1 << 20   # 1 MiB tiles on v5e (16 MiB scoped default)
    return 4 << 20       # 4 MiB tiles on v6e / v7x (32 MiB scoped default)


def _tile_rows(rows, cols, itemsize):
    # dtype-dependent minimum sublane multiple: 8 (f32), 16 (bf16), 32 (int8/fp8).
    sub = max(8, 32 // max(itemsize, 1))
    target = max(sub, (_target_tile_bytes() // (cols * itemsize)) // sub * sub)
    if rows > target:
        return target
    # Whole array fits in one target tile; still split into two blocks when
    # possible so a dual-TensorCore chip (v7x) can stream from both cores.
    if rows >= 2 * sub:
        return _round_up(pl.cdiv(rows, 2), sub)
    # Tiny input: a single block equal to the full array dims (exempt from the
    # (8,128) divisibility rule).
    return rows


def bias_layer(x, alpha, beta):
    """Apply y = alpha * x + beta with scalar alpha, beta (shape (1,))."""
    orig_shape = x.shape
    n = x.size
    cols, needs_pad = _pick_cols(n)

    alpha = jnp.asarray(alpha, dtype=jnp.float32).reshape((1,))
    beta = jnp.asarray(beta, dtype=jnp.float32).reshape((1,))

    if needs_pad:
        # Ragged path: minimal pad to a multiple of the lane width only (the
        # grid's partial last block handles any rows % tile_r remainder).
        rows = pl.cdiv(n, cols)
        xf = jnp.pad(x.reshape(-1), (0, rows * cols - n))
        x2d = xf.reshape(rows, cols)
        io_alias = {2: 0}  # fresh padded temp -> safe to donate, no extra copy
    else:
        # Fast path: lane-dense reshape of the caller's x, no pad, no slice.
        rows = n // cols
        x2d = x.reshape(rows, cols)
        io_alias = {}      # aliasing a non-donated input would force a copy

    tile_r = _tile_rows(rows, cols, x.dtype.itemsize)
    grid = (pl.cdiv(rows, tile_r),)

    y2d = pl.pallas_call(
        _bias_layer_kernel,
        out_shape=jax.ShapeDtypeStruct((rows, cols), x.dtype),
        grid=grid,
        in_specs=[
            pl.BlockSpec(memory_space=pltpu.SMEM),            # alpha (1,)
            pl.BlockSpec(memory_space=pltpu.SMEM),            # beta  (1,)
            pl.BlockSpec((tile_r, cols), lambda i: (i, 0)),   # x tile
        ],
        out_specs=pl.BlockSpec((tile_r, cols), lambda i: (i, 0)),
        input_output_aliases=io_alias,
        compiler_params=pltpu.CompilerParams(
            dimension_semantics=("parallel",),
        ),
    )(alpha, beta, x2d)

    if needs_pad:
        return y2d.reshape(-1)[:n].reshape(orig_shape)
    return y2d.reshape(orig_shape)


if __name__ == "__main__":
    key = jax.random.PRNGKey(0)

    # Small NCHW input, as the module's forward would receive from a conv stack.
    x = jax.random.normal(key, (2, 4, 16, 16), dtype=jnp.float32)

    # 1) Module-default parameters: nn.Parameter(ones(1)) / nn.Parameter(zeros(1)).
    alpha = jnp.ones((1,), dtype=jnp.float32)
    beta = jnp.zeros((1,), dtype=jnp.float32)
    y = jax.block_until_ready(bias_layer(x, alpha, beta))
    ref = alpha[0] * x + beta[0]
    assert y.shape == x.shape and y.dtype == x.dtype
    assert jnp.allclose(y, ref, atol=1e-6, rtol=1e-6)

    # 2) Non-trivial scalars to make sure the affine math (and not just the
    #    identity) is exercised — this hits the no-pad fast path.
    alpha2 = jnp.array([1.5], dtype=jnp.float32)
    beta2 = jnp.array([-0.25], dtype=jnp.float32)
    y2 = jax.block_until_ready(bias_layer(x, alpha2, beta2))
    ref2 = alpha2[0] * x + beta2[0]
    assert jnp.allclose(y2, ref2, atol=1e-6, rtol=1e-6)

    # 3) Ragged size (not a multiple of 128) exercising the padded path +
    #    partial last grid block.
    x3 = jax.random.normal(jax.random.PRNGKey(1), (3, 5, 7), dtype=jnp.float32)
    y3 = jax.block_until_ready(bias_layer(x3, alpha2, beta2))
    ref3 = alpha2[0] * x3 + beta2[0]
    assert y3.shape == x3.shape and y3.dtype == x3.dtype
    assert jnp.allclose(y3, ref3, atol=1e-6, rtol=1e-6)

    print("KERNEL_OK")
</pallas_src>

<mosaic_0001>
module attributes {stable_mosaic.version = 11 : i64} {
  func.func @_bias_layer_kernel(%arg0: i32, %arg1: memref<1xf32, #tpu.memory_space<smem>>, %arg2: memref<1xf32, #tpu.memory_space<smem>>, %arg3: memref<2x1024xf32, #tpu.memory_space<vmem>>, %arg4: memref<2x1024xf32, #tpu.memory_space<vmem>>) attributes {dimension_semantics = [#tpu.dimension_semantics<parallel>], iteration_bounds = array<i64: 1>, scalar_prefetch = 0 : i64, scratch_operands = 0 : i64, tpu.core_type = #tpu.core_type<tc>, window_params = [{transform_indices = @transform_0, window_bounds = array<i64: 1>}, {transform_indices = @transform_1, window_bounds = array<i64: 1>}, {transform_indices = @transform_2, window_bounds = array<i64: 2, 1024>}, {transform_indices = @transform_3, window_bounds = array<i64: 2, 1024>}]} {
    %c0 = arith.constant 0 : index
    %0 = memref.load %arg1[%c0] : memref<1xf32, #tpu.memory_space<smem>>
    %c0_0 = arith.constant 0 : index
    %1 = memref.load %arg2[%c0_0] : memref<1xf32, #tpu.memory_space<smem>>
    %c0_1 = arith.constant 0 : index
    %c0_2 = arith.constant 0 : index
    %2 = vector.load %arg3[%c0_1, %c0_2] : memref<2x1024xf32, #tpu.memory_space<vmem>>, vector<2x1024xf32>
    %3 = vector.broadcast %0 : f32 to vector<2x1024xf32>
    %4 = arith.mulf %3, %2 : vector<2x1024xf32>
    %5 = vector.broadcast %1 : f32 to vector<2x1024xf32>
    %6 = arith.addf %4, %5 : vector<2x1024xf32>
    %c0_3 = arith.constant 0 : index
    %c0_4 = arith.constant 0 : index
    %7 = vector.load %arg4[%c0_3, %c0_4] : memref<2x1024xf32, #tpu.memory_space<vmem>>, vector<2x1024xf32>
    tpu.vector_store %arg4[%c0_3, %c0_4], %6 {strides = array<i32>} : memref<2x1024xf32, #tpu.memory_space<vmem>>, vector<2x1024xf32>,
    return
  }
  func.func @transform_0(%arg0: i32) -> i32 {
    %c0_i32 = arith.constant 0 : i32
    %c0_i32_0 = arith.constant 0 : i32
    return %c0_i32 : i32
  }
  func.func @transform_1(%arg0: i32) -> i32 {
    %c0_i32 = arith.constant 0 : i32
    %c0_i32_0 = arith.constant 0 : i32
    return %c0_i32 : i32
  }
  func.func @transform_2(%arg0: i32) -> (i32, i32) {
    %c0_i32 = arith.constant 0 : i32
    %c0_i32_0 = arith.constant 0 : i32
    return %arg0, %c0_i32 : i32, i32
  }
  func.func @transform_3(%arg0: i32) -> (i32, i32) {
    %c0_i32 = arith.constant 0 : i32
    %c0_i32_0 = arith.constant 0 : i32
    return %arg0, %c0_i32 : i32, i32
  }
}

</mosaic_0001>

<bundles_post_ra>
// kernel: tpu_custom_call.1
= control target key start
LH: loop header
LB: loop body
LE: loop exit
PB: predicated region body
PF: predicated region fallthrough
CT: control target
= control target key end

     0   :  { %10 = vsyncpa [#allocation5], 0  ;;  %s136_s0 = inlined_call_operand.<no memory space> [shape: f32[1], index: 0, kind: input, shape index: {}]   ;;  %s137_s1 = inlined_call_operand.<no memory space> [shape: f32[1], index: 1, kind: input, shape index: {}]   ;;  %s138_s2 = inlined_call_operand.hbm [shape: f32[2,1024], index: 2, kind: input, shape index: {}]   ;;  %s139_s3 = inlined_call_operand.hbm [shape: f32[2,1024], index: 3, kind: output, shape index: {}]  }
   0x1   :  { %11 = vsyncpa [#allocation6], 0  ;;  %s102_s12 = smov [#allocation4]  }
   0x2   :  { %s22_s13 = sshll.u32 %s102_s12, 4  ;;  %s23_s13 = int_to_ptr.vmem [resolvable:$true] %s22_s13 }
   0x3   :  { %s66_s14 = scalar_lea.vmem %s23_s13, 256  ;;  %p71_p1 = scmp.lt.s32.totalorder %s23_s13, %s23_s13 }
   0x4   :  { %p67_p0 = scmp.ne.s32.totalorder %s23_s13, %s66_s14  ;;  %p72_p2 = scmp.lt.s32.totalorder %s66_s14, %s66_s14 }
   0x6   :  { %p73_p3 = por %p72_p2, %p71_p1 }
   0x8   :  { %p74_p4 = pnand %p73_p3, %p67_p0 }
   0xa   :  { %77 = shalt.err (!%p74_p4)
}
   0xb   :  { %25 = dma.hbm_to_vmem [thread:$0]  %s138_s2, 256, %s23_s13, [#allocation5]  }
   0xc   :  { %98 = dma.done.wait [#allocation5], 256  }
   0xd   :  { %99 = vsyncadd [#allocation5], 4294967040  ;;  %v33_v0 = vstv %s136_s0  ;;  %v31_v1 = vld [vmem:[#allocation4] sm:$0xff]  ;;  %v36_v2 = vstv %s137_s1  ;;  %v32_v3 = vld [vmem:[#allocation4 + $0x8] sm:$0xff]  ;;  %s103_s21 = smov [#allocation7]  }
   0xe   :  { %s47_s22 = sshll.u32 %s103_s21, 4  ;;  %v34_v4 = vmul.f32 %v33_v0, %v31_v1  ;;  %v35_v5 = vmul.f32 %v33_v0, %v32_v3  ;;  %s48_s22 = int_to_ptr.vmem [resolvable:$true] %s47_s22 }
   0xf   :  { %s78_s2 = scalar_lea.vmem %s48_s22, 256  ;;  %p83_p6 = scmp.lt.s32.totalorder %s48_s22, %s48_s22 }
  0x10   :  { %v37_v6 = vadd.f32 %v36_v2, %v34_v4  ;;  %v38_v7 = vadd.f32 %v36_v2, %v35_v5  ;;  %p79_p5 = scmp.ne.s32.totalorder %s48_s22, %s78_s2  ;;  %p84_p7 = scmp.lt.s32.totalorder %s78_s2, %s78_s2 }
  0x12   :  { %39 = vst [vmem:[#allocation7] sm:$0xff] %v37_v6  ;;  %40 = vst [vmem:[#allocation7 + $0x8] sm:$0xff] %v38_v7  ;;  %p85_p8 = por %p84_p7, %p83_p6 }
  0x14   :  { %p86_p9 = pnand %p85_p8, %p79_p5 }
  0x16   :  { %89 = shalt.err (!%p86_p9)
}
  0x17   :  { %50 = dma.vmem_to_hbm [thread:$0]  %s48_s22, 256, %s139_s3, [#allocation6]  }
  0x18   :  { %100 = dma.done.wait [#allocation6], 256  }
  0x19   :  { %101 = vsyncadd [#allocation6], 4294967040 }
  0x1a   :  { %54 = vsyncpa [#allocation5], 1 }
  0x1b   :  { %55 = vsyncpa [#allocation6], 1 }

</bundles_post_ra>
